<compile_context>
chip_gen: v6e
topology: v6e:2x2x1
jax: 0.10.0
libtpu: 0.0.40
codegen_flags: <defaults>
</compile_context>

<pallas_src>
import functools

import jax
import jax.numpy as jnp
from jax.experimental import pallas as pl
from jax.experimental.pallas import tpu as pltpu

ALPHA = 0.8
GAMMA = 2

LANE = 128            # vreg lane width
SUBLANE = 8           # f32 sublane height
MAX_TILE_ROWS = 1024  # (1024,128) f32 tile = 512 KiB; 2 inputs x 2 buffers = 2 MiB VMEM
NCORES = 2            # leading parallel grid axis (v7x dual TC); sequential on 1-TC chips
PAD_LOGIT = -1e9      # softplus-BCE of (logit=-1e9, target=0) is exactly 0.0


def _round_up(x, m):
    return (x + m - 1) // m * m


def _focal_bce_partials_kernel(x_ref, t_ref, o_ref, *, tiles_per_core,
                               tile_rows, rows):
    """Accumulate per-lane partial sums of BCE-with-logits into o_ref (8,128)."""
    c = pl.program_id(0)   # core-parallel axis
    j = pl.program_id(1)   # streaming reduction axis

    @pl.when(j == 0)
    def _():
        o_ref[...] = jnp.zeros_like(o_ref)

    tile_idx = c * tiles_per_core + j      # logical (un-clamped) tile index
    row_start = tile_idx * tile_rows

    def accumulate(masked):
        x = x_ref[...].astype(jnp.float32)
        t = t_ref[...].astype(jnp.float32)
        # BCE directly from logits: max(x,0) - x*t + log1p(exp(-|x|))
        # (2 EUP pushes per vreg vs. 4 for sigmoid + log + log1p).
        # Clamp at 100 to mimic torch.binary_cross_entropy's log clamp at -100.
        bce = jnp.maximum(x, 0.0) - x * t + jnp.log1p(jnp.exp(-jnp.abs(x)))
        bce = jnp.minimum(bce, 100.0)
        if masked:
            r = jax.lax.broadcasted_iota(jnp.int32, bce.shape, 0)
            bce = jnp.where(row_start + r < rows, bce, 0.0)
        # Fold sublane-groups together: pure vreg-wise VPU adds. The single
        # cross-lane/sublane reduce happens once, in the wrapper epilogue.
        o_ref[...] += jnp.sum(bce.reshape(-1, SUBLANE, LANE), axis=0)

    in_bounds = row_start + tile_rows <= rows   # tile fully covered by real rows

    @pl.when(in_bounds)
    def _():
        accumulate(masked=False)

    @pl.when(jnp.logical_not(in_bounds))
    def _():
        accumulate(masked=True)


def focal_loss(inputs, targets, alpha=ALPHA, gamma=GAMMA, smooth=1):
    """Pallas TPU implementation of FocalLoss.forward (returns f32 scalar)."""
    del smooth  # unused in the reference forward
    x = inputs.reshape(-1)
    t = targets.reshape(-1)
    n = x.shape[0]

    # Lane padding only when the flat size is not a multiple of 128 (rare for
    # NCHW tensors). Padded (logit=-1e9, target=0) elements contribute exactly
    # 0 to the BCE sum, so they need no in-kernel masking.
    lane_pad = (-n) % LANE
    if lane_pad:
        # TODO(synk): a fully copy-free ragged tail would need a manual-DMA path.
        x = jnp.pad(x, (0, lane_pad), constant_values=PAD_LOGIT)
        t = jnp.pad(t, (0, lane_pad), constant_values=0)

    rows = (n + lane_pad) // LANE
    x2 = x.reshape(rows, LANE)
    t2 = t.reshape(rows, LANE)

    tile_rows = min(MAX_TILE_ROWS, _round_up(rows, SUBLANE))
    num_tiles = pl.cdiv(rows, tile_rows)
    tiles_per_core = pl.cdiv(num_tiles, NCORES)
    last_tile = num_tiles - 1

    def in_index_map(c, j):
        # Clamp so DMAs never request a block past the array; the kernel masks
        # out (contributes 0 for) any tile whose logical rows lie past `rows`.
        return (jnp.minimum(c * tiles_per_core + j, last_tile), 0)

    kernel = functools.partial(
        _focal_bce_partials_kernel,
        tiles_per_core=tiles_per_core, tile_rows=tile_rows, rows=rows)

    partials = pl.pallas_call(
        kernel,
        out_shape=jax.ShapeDtypeStruct((NCORES * SUBLANE, LANE), jnp.float32),
        grid_spec=pltpu.PrefetchScalarGridSpec(
            num_scalar_prefetch=0,
            grid=(NCORES, tiles_per_core),
            in_specs=[
                pl.BlockSpec((tile_rows, LANE), in_index_map),
                pl.BlockSpec((tile_rows, LANE), in_index_map),
            ],
            out_specs=pl.BlockSpec((SUBLANE, LANE), lambda c, j: (c, 0)),
        ),
        compiler_params=pltpu.CompilerParams(
            dimension_semantics=("parallel", "arbitrary")),
    )(x2, t2)

    # Tiny scalar epilogue on the wrapper side: one cross-lane reduce of the
    # per-core (8,128) partials, then the focal transform.
    mean_bce = jnp.sum(partials) / jnp.float32(n)
    bce_exp = jnp.exp(-mean_bce)
    return alpha * (1.0 - bce_exp) ** gamma * mean_bce


def _focal_loss_ref(inputs, targets, alpha=ALPHA, gamma=GAMMA):
    """Pure-JAX reference matching the PyTorch forward."""
    p = jax.nn.sigmoid(inputs).reshape(-1).astype(jnp.float32)
    t = targets.reshape(-1).astype(jnp.float32)
    bce = -(t * jnp.maximum(jnp.log(p), -100.0)
            + (1.0 - t) * jnp.maximum(jnp.log1p(-p), -100.0))
    bce = jnp.mean(bce)
    return alpha * (1.0 - jnp.exp(-bce)) ** gamma * bce


if __name__ == "__main__":
    key = jax.random.PRNGKey(0)
    k1, k2, k3, k4 = jax.random.split(key, 4)

    # Small segmentation-style shapes: logits and binary targets, NCHW.
    x = jax.random.normal(k1, (2, 4, 16, 16), dtype=jnp.float32)
    targets = (jax.random.uniform(k2, (2, 4, 16, 16)) > 0.5).astype(jnp.float32)

    loss = jax.block_until_ready(focal_loss(x, targets))
    ref = _focal_loss_ref(x, targets)
    assert jnp.allclose(loss, ref, rtol=1e-5, atol=1e-6), (loss, ref)

    # Ragged size exercises the lane-padding + boundary-tile mask path.
    xr = jax.random.normal(k3, (2, 3, 7, 5), dtype=jnp.float32)
    tr = (jax.random.uniform(k4, (2, 3, 7, 5)) > 0.5).astype(jnp.float32)
    loss_r = jax.block_until_ready(focal_loss(xr, tr))
    ref_r = _focal_loss_ref(xr, tr)
    assert jnp.allclose(loss_r, ref_r, rtol=1e-5, atol=1e-6), (loss_r, ref_r)

    print("KERNEL_OK")
</pallas_src>

<mosaic_0001>
module attributes {stable_mosaic.version = 11 : i64} {
  func.func @_focal_bce_partials_kernel(%arg0: i32, %arg1: i32, %arg2: memref<16x128xf32, #tpu.memory_space<vmem>>, %arg3: memref<16x128xf32, #tpu.memory_space<vmem>>, %arg4: memref<8x128xf32, #tpu.memory_space<vmem>>) attributes {dimension_semantics = [#tpu.dimension_semantics<parallel>, #tpu.dimension_semantics<arbitrary>], iteration_bounds = array<i64: 2, 1>, scalar_prefetch = 0 : i64, scratch_operands = 0 : i64, tpu.core_type = #tpu.core_type<tc>, window_params = [{transform_indices = @transform_0, window_bounds = array<i64: 16, 128>}, {transform_indices = @transform_1, window_bounds = array<i64: 16, 128>}, {transform_indices = @transform_2, window_bounds = array<i64: 8, 128>}]} {
    %c0_i32 = arith.constant 0 : i32
    %0 = arith.cmpi eq, %arg1, %c0_i32 : i32
    %1 = arith.extui %0 : i1 to i32
    %c0_i32_0 = arith.constant 0 : i32
    %2 = arith.cmpi ne, %1, %c0_i32_0 : i32
    scf.if %2 {
      %cst = arith.constant 0.000000e+00 : f32
      %13 = vector.broadcast %cst : f32 to vector<8x128xf32>
      %c0 = arith.constant 0 : index
      %c0_5 = arith.constant 0 : index
      %14 = vector.load %arg4[%c0, %c0_5] : memref<8x128xf32, #tpu.memory_space<vmem>>, vector<8x128xf32>
      tpu.vector_store %arg4[%c0, %c0_5], %13 {strides = array<i32>} : memref<8x128xf32, #tpu.memory_space<vmem>>, vector<8x128xf32>,
    } else {
    }
    %c1_i32 = arith.constant 1 : i32
    %3 = arith.muli %arg0, %c1_i32 : i32
    %4 = arith.addi %3, %arg1 : i32
    %c16_i32 = arith.constant 16 : i32
    %5 = arith.muli %4, %c16_i32 : i32
    %c16_i32_1 = arith.constant 16 : i32
    %6 = arith.addi %5, %c16_i32_1 : i32
    %c16_i32_2 = arith.constant 16 : i32
    %7 = arith.cmpi sle, %6, %c16_i32_2 : i32
    %8 = arith.extui %7 : i1 to i32
    %c0_i32_3 = arith.constant 0 : i32
    %9 = arith.cmpi ne, %8, %c0_i32_3 : i32
    scf.if %9 {
      %c0 = arith.constant 0 : index
      %c0_5 = arith.constant 0 : index
      %13 = vector.load %arg2[%c0, %c0_5] : memref<16x128xf32, #tpu.memory_space<vmem>>, vector<16x128xf32>
      %c0_6 = arith.constant 0 : index
      %c0_7 = arith.constant 0 : index
      %14 = vector.load %arg3[%c0_6, %c0_7] : memref<16x128xf32, #tpu.memory_space<vmem>>, vector<16x128xf32>
      %cst = arith.constant 0.000000e+00 : f32
      %15 = vector.broadcast %cst : f32 to vector<16x128xf32>
      %16 = arith.maximumf %13, %15 : vector<16x128xf32>
      %17 = arith.mulf %13, %14 : vector<16x128xf32>
      %18 = arith.subf %16, %17 : vector<16x128xf32>
      %19 = math.absf %13 : vector<16x128xf32>
      %cst_8 = arith.constant 0.000000e+00 : f32
      %20 = vector.broadcast %cst_8 : f32 to vector<16x128xf32>
      %21 = arith.subf %20, %19 : vector<16x128xf32>
      %22 = math.exp %21 : vector<16x128xf32>
      %23 = math.log1p %22 : vector<16x128xf32>
      %24 = arith.addf %18, %23 : vector<16x128xf32>
      %cst_9 = arith.constant 1.000000e+02 : f32
      %25 = vector.broadcast %cst_9 : f32 to vector<16x128xf32>
      %26 = arith.minimumf %24, %25 : vector<16x128xf32>
      %c0_10 = arith.constant 0 : index
      %c0_11 = arith.constant 0 : index
      %27 = vector.load %arg4[%c0_10, %c0_11] : memref<8x128xf32, #tpu.memory_space<vmem>>, vector<8x128xf32>
      %28 = vector.shape_cast %26 : vector<16x128xf32> to vector<2x8x128xf32>
      %cst_12 = arith.constant dense<0.000000e+00> : vector<8x128xf32>
      %29 = vector.multi_reduction <add>, %28, %cst_12 [0] : vector<2x8x128xf32> to vector<8x128xf32>
      %30 = arith.addf %27, %29 : vector<8x128xf32>
      %c0_13 = arith.constant 0 : index
      %c0_14 = arith.constant 0 : index
      %31 = vector.load %arg4[%c0_13, %c0_14] : memref<8x128xf32, #tpu.memory_space<vmem>>, vector<8x128xf32>
      tpu.vector_store %arg4[%c0_13, %c0_14], %30 {strides = array<i32>} : memref<8x128xf32, #tpu.memory_space<vmem>>, vector<8x128xf32>,
    } else {
    }
    %true = arith.constant true
    %10 = arith.xori %7, %true : i1
    %11 = arith.extui %10 : i1 to i32
    %c0_i32_4 = arith.constant 0 : i32
    %12 = arith.cmpi ne, %11, %c0_i32_4 : i32
    scf.if %12 {
      %c0 = arith.constant 0 : index
      %c0_5 = arith.constant 0 : index
      %13 = vector.load %arg2[%c0, %c0_5] : memref<16x128xf32, #tpu.memory_space<vmem>>, vector<16x128xf32>
      %c0_6 = arith.constant 0 : index
      %c0_7 = arith.constant 0 : index
      %14 = vector.load %arg3[%c0_6, %c0_7] : memref<16x128xf32, #tpu.memory_space<vmem>>, vector<16x128xf32>
      %cst = arith.constant 0.000000e+00 : f32
      %15 = vector.broadcast %cst : f32 to vector<16x128xf32>
      %16 = arith.maximumf %13, %15 : vector<16x128xf32>
      %17 = arith.mulf %13, %14 : vector<16x128xf32>
      %18 = arith.subf %16, %17 : vector<16x128xf32>
      %19 = math.absf %13 : vector<16x128xf32>
      %cst_8 = arith.constant 0.000000e+00 : f32
      %20 = vector.broadcast %cst_8 : f32 to vector<16x128xf32>
      %21 = arith.subf %20, %19 : vector<16x128xf32>
      %22 = math.exp %21 : vector<16x128xf32>
      %23 = math.log1p %22 : vector<16x128xf32>
      %24 = arith.addf %18, %23 : vector<16x128xf32>
      %cst_9 = arith.constant 1.000000e+02 : f32
      %25 = vector.broadcast %cst_9 : f32 to vector<16x128xf32>
      %26 = arith.minimumf %24, %25 : vector<16x128xf32>
      %27 = tpu.iota {dimensions = array<i32: 0>} : vector<16x128xi32>
      %28 = vector.broadcast %5 : i32 to vector<16x128xi32>
      %29 = arith.addi %28, %27 : vector<16x128xi32>
      %c16_i32_10 = arith.constant 16 : i32
      %30 = vector.broadcast %c16_i32_10 : i32 to vector<16x128xi32>
      %31 = arith.cmpi slt, %29, %30 : vector<16x128xi32>
      %cst_11 = arith.constant 0.000000e+00 : f32
      %32 = vector.broadcast %cst_11 : f32 to vector<16x128xf32>
      %33 = arith.select %31, %26, %32 : vector<16x128xi1>, vector<16x128xf32>
      %c0_12 = arith.constant 0 : index
      %c0_13 = arith.constant 0 : index
      %34 = vector.load %arg4[%c0_12, %c0_13] : memref<8x128xf32, #tpu.memory_space<vmem>>, vector<8x128xf32>
      %35 = vector.shape_cast %33 : vector<16x128xf32> to vector<2x8x128xf32>
      %cst_14 = arith.constant dense<0.000000e+00> : vector<8x128xf32>
      %36 = vector.multi_reduction <add>, %35, %cst_14 [0] : vector<2x8x128xf32> to vector<8x128xf32>
      %37 = arith.addf %34, %36 : vector<8x128xf32>
      %c0_15 = arith.constant 0 : index
      %c0_16 = arith.constant 0 : index
      %38 = vector.load %arg4[%c0_15, %c0_16] : memref<8x128xf32, #tpu.memory_space<vmem>>, vector<8x128xf32>
      tpu.vector_store %arg4[%c0_15, %c0_16], %37 {strides = array<i32>} : memref<8x128xf32, #tpu.memory_space<vmem>>, vector<8x128xf32>,
    } else {
    }
    return
  }
  func.func @transform_0(%arg0: i32, %arg1: i32) -> (i32, i32) {
    %c1_i32 = arith.constant 1 : i32
    %0 = arith.muli %arg0, %c1_i32 : i32
    %1 = arith.addi %0, %arg1 : i32
    %c0_i32 = arith.constant 0 : i32
    %2 = arith.minsi %1, %c0_i32 : i32
    %c0_i32_0 = arith.constant 0 : i32
    %c0_i32_1 = arith.constant 0 : i32
    return %2, %c0_i32_0 : i32, i32
  }
  func.func @transform_1(%arg0: i32, %arg1: i32) -> (i32, i32) {
    %c1_i32 = arith.constant 1 : i32
    %0 = arith.muli %arg0, %c1_i32 : i32
    %1 = arith.addi %0, %arg1 : i32
    %c0_i32 = arith.constant 0 : i32
    %2 = arith.minsi %1, %c0_i32 : i32
    %c0_i32_0 = arith.constant 0 : i32
    %c0_i32_1 = arith.constant 0 : i32
    return %2, %c0_i32_0 : i32, i32
  }
  func.func @transform_2(%arg0: i32, %arg1: i32) -> (i32, i32) {
    %c0_i32 = arith.constant 0 : i32
    %c0_i32_0 = arith.constant 0 : i32
    return %arg0, %c0_i32 : i32, i32
  }
}

</mosaic_0001>

<bundles_post_ra>
// kernel: tpu_custom_call.1
= control target key start
LH: loop header
LB: loop body
LE: loop exit
PB: predicated region body
PF: predicated region fallthrough
CT: control target
= control target key end

     0   :  { %7 = vsyncpa [#allocation3], 0  ;;  %s997_s0 = inlined_call_operand.hbm [shape: f32[16,128], index: 0, kind: input, shape index: {}]   ;;  %s998_s1 = inlined_call_operand.hbm [shape: f32[16,128], index: 1, kind: input, shape index: {}]   ;;  %s999_s2 = inlined_call_operand.hbm [shape: f32[16,128], index: 2, kind: output, shape index: {}]  }
   0x1   :  { %9 = vsyncpa [#allocation3 + $0x1], 0 }
   0x2   :  { %10 = vsyncpa [#allocation6], 0 }
   0x3   :  { %12 = vsyncpa [#allocation6 + $0x1], 0 }
   0x4   :  { %13 = vsyncpa [#allocation4], 0 }
   0x5   :  { %15 = vsyncpa [#allocation4 + $0x1], 0  ;;  %s786_s9 = smov 0   ;;  %s788_s10 = smov 0  }
   0x6   :  { %s790_s11 = smov 0   ;;  %s792_s12 = smov 0  }
   0x7   :  { %s794_s13 = smov 0   ;;  %s796_s14 = smov 0  }
   0x8   :  { %s798_s15 = smov 0   ;;  %s800_s16 = smov 0  }
   0x9 LB: > { %s469_s17 = sadd.s32 4294967295, %s763_s16   ;;  %s470_s18 = sadd.s32 4294967294, %s763_s16   ;;  %s763_s16 = sphi %s800_s16, %s21_s16   ;;  %s759_s15 = sphi %s798_s15, %s1018_s15   ;;  %s755_s14 = sphi %s796_s14, %s1017_s14   ;;  %s751_s13 = sphi %s794_s13, %s987_s13   ;;  %s747_s12 = sphi %s792_s12, %s1016_s12   ;;  %s743_s11 = sphi %s790_s11, %s1015_s11   ;;  %s739_s10 = sphi %s788_s10, %s1014_s10   ;;  %s735_s9 = sphi %s786_s9, %s1013_s9  }
   0xa   : > { %s33_s19 = sadd.s32 1, %s759_s15  ;;  %p732_p1 = scmp.ne.s32.totalorder %s751_s13, 0 }
   0xb   : > { %p35_p0 = scmp.ge.s32.totalorder %s33_s19, 2  ;;  %p54_p2 = scmp.eq.s32.totalorder %s763_s16, 0 }
   0xc   : > { %p59_p3 = scmp.ne.s32.totalorder %s751_s13, %s747_s12  ;;  %p60_p5 = scmp.eq.s32.totalorder %s469_s17, 0 }
   0xd   : > { %s1020_s19 = smov (%p35_p0, %s33_s19), 0  ;;  %p832_p4 = por %p732_p1, %p54_p2 }
   0xe   : > { %p836_p6 = por %p60_p5, %p59_p3  ;;  %s101_s22 = ssub.s32 %s759_s15, %s1020_s19 }
   0xf   : > { %p102_p7 = scmp.eq.s32.totalorder %s101_s22, 0  ;;  %s104_s23 = sadd.s32 1, %s743_s11 }
  0x10   : > { %s1003_s21 = scalar_select %p836_p6, 1, 0 }
  0x11   : > { %s844_s24 = scalar_select %p102_p7, %s743_s11, %s104_s23  }
  0x12   : > { %p114_p8 = scmp.ne.s32.totalorder %s743_s11, %s739_s10  ;;  %p115_p9 = scmp.eq.s32.totalorder %s469_s17, 1 }
  0x13   : > { %p120_p10 = scmp.ne.s32.totalorder %s739_s10, %s735_s9  ;;  %p121_p11 = scmp.eq.s32.totalorder %s470_s18, 1 }
  0x14   : > { %p850_p12 = por %p115_p9, %p114_p8  ;;  %p509_p1 = scmp.lt.s32.totalorder %s763_s16, 2 }
  0x15   : > { %p855_p0 = por %p121_p11, %p120_p10  ;;  %s765_s27 = smov [#allocation2]  }
  0x16   : > { %s1004_s25 = scalar_select %p850_p12, 1, 0 }
  0x17   : > { %s1005_s26 = scalar_select %p855_p0, 1, 0 }
  0x18   : > { %s155_s28 = sshll.u32 %s765_s27, 4  ;;  %p862_p2 = pnand %p509_p1, %p832_p4  ;;  %s156_s28 = int_to_ptr.vmem [resolvable:$true] %s155_s28 }
  0x19   : > { %s602_s4 = scalar_lea.hbm %s997_s0, 256 }
  0x1a   : > { %p603_p3 = scmp.ne.s32.totalorder %s997_s0, %s602_s4  ;;  %p604_p5 = pneg %p862_p2 }
  0x1b   : > { %p609_p8 = scmp.lt.s32.totalorder %s602_s4, %s602_s4 }
  0x1c   : > { %p605_p7 = pnand %p604_p5, %p603_p3 }
  0x1e   : > { %p606_p4 = pneg %p605_p7 }
  0x20   : > { %p611_p9 = pnand %p609_p8, %p606_p4 }
  0x22   : > { %614 = shalt.err (!%p611_p9)
}
  0x23   : > { %s615_s7 = scalar_lea.vmem %s156_s28, 256  ;;  %s622_s8 = scalar_lea.vmem %s156_s28, 512 }
  0x24   : > { %p616_p10 = scmp.ne.s32.totalorder %s156_s28, %s615_s7  ;;  %p623_p13 = scmp.lt.s32.totalorder %s156_s28, %s156_s28 }
  0x25   : > { %p624_p0 = scmp.lt.s32.totalorder %s622_s8, %s615_s7 }
  0x26   : > { %p618_p11 = pnand %p616_p10, %p604_p5 }
  0x27   : > { %p625_p12 = por %p624_p0, %p623_p13 }
  0x28   : > { %p619_p1 = pneg %p618_p11 }
  0x2a   : > { %p626_p6 = pnand %p625_p12, %p619_p1 }
  0x2c   : > { %629 = shalt.err (!%p626_p6)
}
  0x2d   : > { %s766_s12 = smov 128   ;;  %s767_s17 = smov 8  }
  0x2e   : > { %501 = dma.hbm_to_vmem [thread:$0]  (!%p862_p2), %s997_s0, 256, %s156_s28, [#allocation3], %s766_s12, %s766_s12, %s767_s17  }
  0x2f   : > { %p479_p3 = scmp.ge.s32.totalorder %s763_s16, 1  ;;  %p187_p7 = scmp.lt.s32.totalorder %s763_s16, 3 }
  0x30   : > { %s768_s23 = smov [#allocation5]   ;;  %s630_s4 = scalar_lea.hbm %s998_s1, 256 }
  0x31   : > { %p887_p4 = pnand %p479_p3, %p187_p7  ;;  %s179_s27 = sshll.u32 %s768_s23, 4  ;;  %s180_s27 = int_to_ptr.vmem [resolvable:$true] %s179_s27 }
  0x32   : > { %p631_p6 = scmp.ne.s32.totalorder %s998_s1, %s630_s4  ;;  %p637_p0 = scmp.lt.s32.totalorder %s630_s4, %s630_s4 }
  0x33   : > { %s1007_s22 = scalar_select %p887_p4, 1, 0 }
  0x34   : > { %p633_p12 = pnand %p631_p6, %p604_p5 }
  0x36   : > { %p634_p13 = pneg %p633_p12 }
  0x38   : > { %p639_p8 = pnand %p637_p0, %p634_p13 }
  0x3a   : > { %642 = shalt.err (!%p639_p8)
}
  0x3b   : > { %s643_s28 = scalar_lea.vmem %s180_s27, 256  ;;  %s650_s7 = scalar_lea.vmem %s180_s27, 512 }
  0x3c   : > { %p644_p9 = scmp.ne.s32.totalorder %s180_s27, %s643_s28  ;;  %p651_p1 = scmp.lt.s32.totalorder %s180_s27, %s180_s27 }
  0x3d   : > { %p652_p3 = scmp.lt.s32.totalorder %s650_s7, %s643_s28 }
  0x3e   : > { %p646_p10 = pnand %p644_p9, %p604_p5 }
  0x3f   : > { %p653_p7 = por %p652_p3, %p651_p1 }
  0x40   : > { %p647_p11 = pneg %p646_p10 }
  0x42   : > { %p654_p4 = pnand %p653_p7, %p647_p11 }
  0x44   : > { %657 = shalt.err (!%p654_p4)
}
  0x45   : > { %504 = dma.hbm_to_vmem [thread:$0]  (!%p862_p2), %s998_s1, 256, %s180_s27, [#allocation6], %s766_s12, %s766_s12, %s767_s17  }
  0x46   : > { %p1008_p6 = scmp.ne.s32.totalorder %s1007_s22, 0 }
  0x47   : > { %s193_s20 = sand.u32 (!%p1008_p6), 1, %s751_s13   ;;  %p1009_p5 = scmp.ne.s32.totalorder (!%p1008_p6), %s1003_s21, 0 }
  0x48   : > { %191 = sbr.rel (%p1008_p6) target bundleno = 221 (0xdd), region = 28  ;;  %s480_s23 = sshll.u32 (!%p1008_p6), %s193_s20, 4 }
  0x49   : > { %s194_s30 = scalar_lea.sflag (!%p1008_p6), [#allocation3], %s193_s20  ;;  %s911_s3 = scalar_lea.vmem (!%p1008_p6), [#allocation2], %s480_s23 }
  0x4d   : > { %721 = dma.done.wait (%p1009_p5), %s194_s30, 256  }
  0x4e   : > { %723 = vsyncadd (%p1009_p5), %s194_s30, 4294967040  ;;  %s203_s29 = scalar_lea.sflag [#allocation6], %s193_s20  ;;  %s917_s4 = scalar_lea.vmem [#allocation5], %s480_s23 }
  0x4f   : > { %725 = dma.done.wait (%p1009_p5), %s203_s29, 256  }
  0x50   : > { %727 = vsyncadd (%p1009_p5), %s203_s29, 4294967040  ;;  %s229_s12 = sand.u32 1, %s739_s10   ;;  %s483_s17 = sshll.u32 %s755_s14, 4  ;;  %v769_v0 = vmov 0.0  }
  0x51   : > { %s482_s22 = sshll.u32 %s229_s12, 3  ;;  %s929_s27 = sadd.s32 16, %s483_s17 }
  0x52   : > { %s931_s5 = scalar_lea.vmem [#allocation7], %s482_s22  ;;  %p484_p2 = scmp.gt.s32.totalorder %s929_s27, 16 }
  0x53   : > { %244 = vst [vmem:[%s931_s5] sm:$0xff] %v769_v0 }
  0x54   : > { %251 = sbr.rel (%p484_p2) target bundleno = 139 (0x8b), region = 44 }
  0x59   : > { %v252_v1 = vld [vmem:[%s911_s3] sm:$0xff]  ;;  %v253_v2 = vld [vmem:[%s911_s3 + $0x8] sm:$0xff] }
  0x5a   : > { %v262_v3 = vand.u32 2147483647, %v252_v1  ;;  %v263_v4 = vand.u32 2147483647, %v253_v2  ;;  %v254_v15 = vld [vmem:[%s917_s4] sm:$0xff]  ;;  %v255_v16 = vld [vmem:[%s917_s4 + $0x8] sm:$0xff] }
  0x5b   : > { %v256_v18 = vmax.f32 %v252_v1, 0.0  ;;  %v258_v19 = vmul.f32 %v254_v15, %v252_v1  ;;  %v257_v22 = vmax.f32 %v253_v2, 0.0  ;;  %v259_v23 = vmul.f32 %v255_v16, %v253_v2  ;;  %v292_v39 = vld [vmem:[%s931_s5] sm:$0xff] }
  0x5c   : > { %v264_v5 = vsub.f32 0.0, %v262_v3  ;;  %v265_v6 = vsub.f32 0.0, %v263_v4 }
  0x5d   : > { %v260_v27 = vsub.f32 %v256_v18, %v258_v19  ;;  %v261_v30 = vsub.f32 %v257_v22, %v259_v23 }
  0x5e   : > { %v266_v7 = vmul.f32 1.442695, %v264_v5  ;;  %v268_v8 = vmul.f32 1.442695, %v265_v6 }
  0x60   : > { %586 = vpow2.f32 %v266_v7 }
  0x61   : > { %588 = vpow2.f32 %v268_v8 }
  0x6d   : > { %v587_v9 = vpop.eup %586 }
  0x6e   : > { %v589_v10 = vpop.eup %588  ;;  %v270_v11 = vadd.f32 1.0, %v587_v9  ;;  %v273_v13 = vmul.f32 -0.5, %v587_v9  ;;  %v276_v20 = vand.u32 2147483647, %v587_v9 }
  0x6f   : > { %v279_v12 = vadd.f32 1.0, %v589_v10  ;;  %v282_v14 = vmul.f32 -0.5, %v589_v10  ;;  %v285_v24 = vand.u32 2147483647, %v589_v10 }
  0x70   : > { %590 = vlog2.f32 %v270_v11  ;;  %v274_v17 = vadd.f32 1.0, %v273_v13  ;;  %vm277_vm0 = vcmp.lt.f32.partialorder %v276_v20, 0.0004427343 }
  0x71   : > { %592 = vlog2.f32 %v279_v12  ;;  %v283_v21 = vadd.f32 1.0, %v282_v14  ;;  %vm286_vm1 = vcmp.lt.f32.partialorder %v285_v24, 0.0004427343 }
  0x72   : > { %v275_v25 = vmul.f32 %v587_v9, %v274_v17 }
  0x73   : > { %v284_v28 = vmul.f32 %v589_v10, %v283_v21 }
  0x7d   : > { %v591_v26 = vpop.eup %590 }
  0x7e   : > { %v593_v29 = vpop.eup %592  ;;  %v272_v31 = vmul.f32 0.6931472, %v591_v26 }
  0x7f   : > { %v281_v32 = vmul.f32 0.6931472, %v593_v29 }
  0x80   : > { %v278_v33 = vsel %vm277_vm0, %v275_v25, %v272_v31 }
  0x81   : > { %v287_v34 = vsel %vm286_vm1, %v284_v28, %v281_v32  ;;  %v288_v35 = vadd.f32 %v278_v33, %v260_v27 }
  0x82   : > { %v289_v36 = vadd.f32 %v287_v34, %v261_v30 }
  0x83   : > { %v290_v37 = vmin.f32 %v288_v35, 100.0 }
  0x84   : > { %v291_v38 = vmin.f32 %v289_v36, 100.0 }
  0x86   : > { %v293_v40 = vadd.f32 %v291_v38, %v290_v37 }
  0x88   : > { %v294_v41 = vadd.f32 %v293_v40, %v292_v39 }
  0x8a   : > { %295 = vst [vmem:[%s931_s5] sm:$0xff] %v294_v41 }
  0x8b PF: > { %p485_p4 = scmp.le.s32.totalorder %s929_s27, 16 }
  0x8d   : > { %299 = sbr.rel (%p485_p4) target bundleno = 197 (0xc5), region = 48 }
  0x92   : > { %v300_v42 = vld [vmem:[%s911_s3] sm:$0xff]  ;;  %v301_v43 = vld [vmem:[%s911_s3 + $0x8] sm:$0xff]  ;;  %v340_v54 = vlaneseq  ;;  %v343_v5 = vstv %s483_s17 }
  0x93   : > { %v310_v44 = vand.u32 2147483647, %v300_v42  ;;  %v311_v45 = vand.u32 2147483647, %v301_v43  ;;  %v302_v57 = vld [vmem:[%s917_s4] sm:$0xff]  ;;  %v303_v58 = vld [vmem:[%s917_s4 + $0x8] sm:$0xff] }
  0x94   : > { %v341_v59 = vshrl.u32 %v340_v54, 7  ;;  %v304_v61 = vmax.f32 %v300_v42, 0.0  ;;  %v306_v62 = vmul.f32 %v302_v57, %v300_v42  ;;  %v305_v1 = vmax.f32 %v301_v43, 0.0  ;;  %v350_v24 = vld [vmem:[%s931_s5] sm:$0xff] }
  0x95   : > { %v312_v46 = vsub.f32 0.0, %v310_v44  ;;  %v313_v47 = vsub.f32 0.0, %v311_v45  ;;  %v307_v2 = vmul.f32 %v303_v58, %v301_v43 }
  0x96   : > { %v342_v4 = vadd.s32 8, %v341_v59  ;;  %v308_v8 = vsub.f32 %v304_v61, %v306_v62  ;;  %v344_v13 = vadd.s32 %v343_v5, %v341_v59 }
  0x97   : > { %v314_v48 = vmul.f32 1.442695, %v312_v46  ;;  %v316_v49 = vmul.f32 1.442695, %v313_v47  ;;  %v309_v11 = vsub.f32 %v305_v1, %v307_v2 }
  0x98   : > { %v345_v15 = vadd.s32 %v343_v5, %v342_v4  ;;  %vm346_vm4 = vcmp.lt.s32.totalorder %v344_v13, 16 }
  0x99   : > { %594 = vpow2.f32 %v314_v48 }
  0x9a   : > { %596 = vpow2.f32 %v316_v49  ;;  %vm347_vm5 = vcmp.lt.s32.totalorder %v345_v15, 16 }
  0xa6   : > { %v595_v50 = vpop.eup %594 }
  0xa7   : > { %v597_v51 = vpop.eup %596  ;;  %v318_v52 = vadd.f32 1.0, %v595_v50  ;;  %v321_v55 = vmul.f32 -0.5, %v595_v50  ;;  %v324_v63 = vand.u32 2147483647, %v595_v50 }
  0xa8   : > { %v327_v53 = vadd.f32 1.0, %v597_v51  ;;  %v330_v56 = vmul.f32 -0.5, %v597_v51  ;;  %v333_v3 = vand.u32 2147483647, %v597_v51 }
  0xa9   : > { %598 = vlog2.f32 %v318_v52  ;;  %v322_v60 = vadd.f32 1.0, %v321_v55  ;;  %vm325_vm2 = vcmp.lt.f32.partialorder %v324_v63, 0.0004427343 }
  0xaa   : > { %600 = vlog2.f32 %v327_v53  ;;  %v331_v0 = vadd.f32 1.0, %v330_v56  ;;  %vm334_vm3 = vcmp.lt.f32.partialorder %v333_v3, 0.0004427343 }
  0xab   : > { %v323_v6 = vmul.f32 %v595_v50, %v322_v60 }
  0xac   : > { %v332_v9 = vmul.f32 %v597_v51, %v331_v0 }
  0xb6   : > { %v599_v7 = vpop.eup %598 }
  0xb7   : > { %v601_v10 = vpop.eup %600  ;;  %v320_v12 = vmul.f32 0.6931472, %v599_v7 }
  0xb8   : > { %v329_v14 = vmul.f32 0.6931472, %v601_v10 }
  0xb9   : > { %v326_v16 = vsel %vm325_vm2, %v323_v6, %v320_v12 }
  0xba   : > { %v335_v17 = vsel %vm334_vm3, %v332_v9, %v329_v14  ;;  %v336_v18 = vadd.f32 %v326_v16, %v308_v8 }
  0xbb   : > { %v337_v19 = vadd.f32 %v335_v17, %v309_v11 }
  0xbc   : > { %v338_v20 = vmin.f32 %v336_v18, 100.0 }
  0xbd   : > { %v339_v21 = vmin.f32 %v337_v19, 100.0 }
  0xbe   : > { %v348_v22 = vsel %vm346_vm4, %v338_v20, 0.0 }
  0xbf   : > { %v349_v23 = vsel %vm347_vm5, %v339_v21, 0.0 }
  0xc0   : > { %v351_v25 = vadd.f32 %v349_v23, %v348_v22 }
  0xc2   : > { %v352_v26 = vadd.f32 %v351_v25, %v350_v24 }
  0xc4   : > { %353 = vst [vmem:[%s931_s5] sm:$0xff] %v352_v26 }
  0xc5 PF: > { %s487_s21 = sshll.u32 %s755_s14, 7  ;;  %s368_s8 = sshll.u32 %s931_s5, 4  ;;  %s369_s8 = int_to_ptr.vmem [resolvable:$true] %s368_s8 }
  0xc6   : > { %s366_s7 = scalar_lea.hbm %s999_s2, %s487_s21  ;;  %s355_s18 = scalar_lea.sflag [#allocation4], %s229_s12 }
  0xc7   : > { %s658_s20 = scalar_lea.vmem %s369_s8, 128  ;;  %p1010_p13 = scmp.ne.s32.totalorder %s1004_s25, 0 }
  0xc8   : > { %p659_p12 = scmp.ne.s32.totalorder %s369_s8, %s658_s20  ;;  %s770_s23 = smov [#allocation7]  }
  0xc9   : > { %s662_s30 = sshll.u32 %s770_s23, 4  ;;  %s663_s30 = int_to_ptr.vmem [resolvable:$false] %s662_s30 }
  0xca   : > { %p660_p0 = pnand %p659_p12, %p1010_p13  ;;  %s664_s3 = scalar_lea.vmem %s663_s30, 256 }
  0xcb   : > { %p665_p9 = scmp.lt.s32.totalorder %s369_s8, %s663_s30  ;;  %p666_p10 = scmp.lt.s32.totalorder %s664_s3, %s658_s20 }
  0xcc   : > { %p661_p8 = pneg %p660_p0 }
  0xcd   : > { %p667_p11 = por %p666_p10, %p665_p9 }
  0xcf   : > { %p668_p1 = pnand %p667_p11, %p661_p8 }
  0xd1   : > { %671 = shalt.err (!%p668_p1)
}
  0xd2   : > { %s672_s14 = scalar_lea.hbm %s366_s7, 128  ;;  %s676_s12 = scalar_lea.hbm %s999_s2, 256 }
  0xd3   : > { %p673_p3 = scmp.ne.s32.totalorder %s366_s7, %s672_s14  ;;  %p677_p5 = scmp.lt.s32.totalorder %s366_s7, %s999_s2 }
  0xd4   : > { %p678_p2 = scmp.lt.s32.totalorder %s676_s12, %s672_s14 }
  0xd5   : > { %p674_p7 = pnand %p673_p3, %p1010_p13 }
  0xd6   : > { %p679_p4 = por %p678_p2, %p677_p5 }
  0xd7   : > { %p675_p6 = pneg %p674_p7 }
  0xd9   : > { %p680_p12 = pnand %p679_p4, %p675_p6 }
  0xdb   : > { %683 = shalt.err (!%p680_p12)
}
  0xdc   : > { %496 = dma.vmem_to_hbm [thread:$0]  (%p1010_p13), %s369_s8, 128, %s366_s7, %s355_s18  }
  0xdd PF: > { %s380_s27 = sand.u32 1, %s735_s9   ;;  %p1011_p0 = scmp.ne.s32.totalorder %s1005_s26, 0 }
  0xde   : > { %p1012_p8 = scmp.ge.s32.totalorder %s763_s16, 2  ;;  %s381_s5 = scalar_lea.sflag [#allocation4], %s380_s27 }
  0xe0   : > { %p506_p9 = pnand %p1012_p8, %p1011_p0 }
  0xe2   : > { %p507_p10 = pneg %p506_p9 }
  0xe4   : > { %729 = dma.done.wait (%p507_p10), %s381_s5, 128  }
  0xe5   : > { %731 = vsyncadd (%p507_p10), %s381_s5, 4294967168  ;;  %s21_s16 = sadd.s32 1, %s763_s16   ;;  %s1013_s9 = smov %s739_s10 }
  0xe6   : > { %p18_p11 = scmp.ge.s32.totalorder %s21_s16, 4   ;;  %s1014_s10 = smov %s743_s11 }
  0xe7   : > { %s1015_s11 = smov %s844_s24  ;;  %s1016_s12 = smov %s751_s13 }
  0xe8   : > { %s987_s13 = smov 0   ;;  %s1017_s14 = smov %s759_s15 }
  0xe9   : > { %s1018_s15 = smov %s1020_s19  ;;  %20 = sbr.rel (!%p18_p11) target bundleno = 9 (0x9), region = 98 }
  0xee   :  { %386 = vsyncpa [#allocation3], 1 }
  0xef   :  { %388 = vsyncpa [#allocation3 + $0x1], 1 }
  0xf0   :  { %389 = vsyncpa [#allocation6], 1 }
  0xf1   :  { %391 = vsyncpa [#allocation6 + $0x1], 1 }
  0xf2   :  { %392 = vsyncpa [#allocation4], 1 }
  0xf3   :  { %394 = vsyncpa [#allocation4 + $0x1], 1 }

</bundles_post_ra>
